<compile_context>
chip_gen: v7x
topology: tpu7x:2x2x1
jax: 0.10.0
libtpu: 0.0.40
codegen_flags: <defaults>
</compile_context>

<pallas_src>
import jax
import jax.numpy as jnp
from jax.experimental import pallas as pl
from jax.experimental.pallas import tpu as pltpu

# ----------------------------- configuration --------------------------------
IN_CHANNELS = 4
OUT_CHANNELS = 8          # out_channels; each branch produces out_channels // 2
KH = KW = 2               # kernel_size = 2
STRIDE = 2                # stride = 2 (== kernel_size, padding = 0)

# Per-grid-step lane budget (nb * tm).  HBM bytes per lane per step:
#   2 inputs * Cin * 4B + 2 outputs * Cout*kh*kw * 4B = 2*16 + 2*64 = 160 B,
# double-buffered => ~320 B/lane of VMEM.  32768 lanes => ~10.5 MiB, safe on
# v5e/v6e (128 MiB VMEM) and under v7x's 32 MiB scoped default.
MAX_LANES_PER_STEP = 32768
MAX_BATCH_BLOCK = 32      # cap on images per grid step (kernel loop is unrolled)


def _round_up(x, m):
    return ((x + m - 1) // m) * m


def _largest_divisor_leq(total, cap):
    """Largest divisor of `total` that is <= cap (>= 1)."""
    cap = max(1, min(cap, total))
    for d in range(cap, 0, -1):
        if total % d == 0:
            return d
    return 1


# -------------------- forward / backward operators (NCHW) --------------------
# Centered, ortho-normalized FFT2 / iFFT2 applied to (real, imag) channel pairs.
# Equivalent to direct.data.transforms.fft2/ifft2 on the NHWC pair-split used by
# the PyTorch module, applied directly in NCHW (no wrapper transposes needed).
def _fft2_pairs_nchw(x, inverse=False):
    n, c, h, w = x.shape
    xc = x.reshape(n, c // 2, 2, h, w)
    z = jax.lax.complex(xc[:, :, 0], xc[:, :, 1])
    z = jnp.fft.ifftshift(z, axes=(-2, -1))
    z = (jnp.fft.ifftn if inverse else jnp.fft.fftn)(z, axes=(-2, -1), norm="ortho")
    z = jnp.fft.fftshift(z, axes=(-2, -1))
    out = jnp.stack([jnp.real(z), jnp.imag(z)], axis=2)   # (N, C//2, 2, H, W)
    return out.reshape(n, c, h, w)


# ------------------------------ Pallas kernel --------------------------------
def _fused_convt_kernel(ximg_ref, xks_ref, wimg_ref, wks_ref,
                        bimg_ref, bks_ref, oimg_ref, oks_ref):
    # x*_ref: (nb, Cin, tm)          -- pixels on the lane axis
    # w*_ref: (Cout*kh*kw, Cin)      -- tiny, stays resident in VMEM
    # b*_ref: (Cout*kh*kw, 1)
    # o*_ref: (nb, Cout*kh*kw, tm)   -- lane-dense output stores
    w_img = wimg_ref[...]
    w_ks = wks_ref[...]
    b_img = bimg_ref[...]
    b_ks = bks_ref[...]
    nb = ximg_ref.shape[0]
    for ib in range(nb):   # static, small (<= MAX_BATCH_BLOCK)
        oimg_ref[ib] = (
            jnp.dot(w_img, ximg_ref[ib], preferred_element_type=jnp.float32)
            + b_img
        ).astype(oimg_ref.dtype)
        oks_ref[ib] = (
            jnp.dot(w_ks, xks_ref[ib], preferred_element_type=jnp.float32)
            + b_ks
        ).astype(oks_ref.dtype)


def _fused_conv_transpose(image_nchw, kspace_nchw, params, *, kh=KH, kw=KW):
    """Both branch ConvTranspose2d (stride == kernel_size, padding == 0) fused
    into a single pallas_call.  Returns (image_branch, kspace_branch) in NCHW,
    each of shape (N, Cout, H*kh, W*kw)."""
    n, cin, h, w = image_nchw.shape
    cout = params["image_w"].shape[1]
    ckk = cout * kh * kw
    hw = h * w

    # pixels-on-lanes layout straight from NCHW (trailing-dim merge, no copy)
    x_img = image_nchw.reshape(n, cin, hw)
    x_ks = kspace_nchw.reshape(n, cin, hw)

    # Lane-align the pixel axis.  For every realistic decoder size H*W is already
    # a multiple of 128, so this pad (an extra HBM pass) never triggers.
    # TODO(synk): rely on Pallas ragged-final-block masking instead of this rare
    # <=127-lane pad once OOB boundary-block semantics are verified on all gens.
    m_aligned = _round_up(hw, 128)
    if m_aligned != hw:
        pad = ((0, 0), (0, 0), (0, m_aligned - hw))
        x_img = jnp.pad(x_img, pad)
        x_ks = jnp.pad(x_ks, pad)

    # ------------------ tile / batch-block / grid selection ------------------
    lanes = m_aligned // 128                         # pixel tiles of 128 lanes
    tl = _largest_divisor_leq(lanes, MAX_LANES_PER_STEP // 128)
    nb = _largest_divisor_leq(
        n, max(1, min(MAX_BATCH_BLOCK, MAX_LANES_PER_STEP // (tl * 128))))
    # Guarantee >= 2 grid steps when possible so v7x's two TensorCores both get
    # work (grid axes are marked "parallel"); no-op on single-TC v5e/v6e.
    while (n // nb) * (lanes // tl) < 2:
        if nb > 1:
            nb = _largest_divisor_leq(n, nb - 1)
        elif tl > 1:
            tl = _largest_divisor_leq(lanes, (tl + 1) // 2)
        else:
            break
    tm = tl * 128
    grid = (n // nb, lanes // tl)

    def _wt(wgt):   # PyTorch (Cin, Cout, kh, kw) -> (Cout*kh*kw, Cin)
        return jnp.transpose(wgt, (1, 2, 3, 0)).reshape(ckk, cin)

    def _bc(bias):  # (Cout,) -> (Cout*kh*kw, 1), replicated per (kh, kw) slot
        return jnp.repeat(bias[:, None], kh * kw, axis=1).reshape(ckk, 1)

    w_img, w_ks = _wt(params["image_w"]), _wt(params["kspace_w"])
    b_img, b_ks = _bc(params["image_b"]), _bc(params["kspace_b"])

    flops = 2 * 2 * n * m_aligned * cin * ckk
    bytes_accessed = 4 * (2 * n * m_aligned * cin + 2 * n * m_aligned * ckk
                          + 2 * ckk * cin + 2 * ckk)

    out_sds = jax.ShapeDtypeStruct((n, ckk, m_aligned), image_nchw.dtype)
    out_img, out_ks = pl.pallas_call(
        _fused_convt_kernel,
        out_shape=(out_sds, out_sds),
        grid_spec=pltpu.PrefetchScalarGridSpec(
            num_scalar_prefetch=0,
            grid=grid,
            in_specs=[
                pl.BlockSpec((nb, cin, tm), lambda b, t: (b, 0, t)),
                pl.BlockSpec((nb, cin, tm), lambda b, t: (b, 0, t)),
                pl.BlockSpec((ckk, cin), lambda b, t: (0, 0)),
                pl.BlockSpec((ckk, cin), lambda b, t: (0, 0)),
                pl.BlockSpec((ckk, 1), lambda b, t: (0, 0)),
                pl.BlockSpec((ckk, 1), lambda b, t: (0, 0)),
            ],
            out_specs=[
                pl.BlockSpec((nb, ckk, tm), lambda b, t: (b, 0, t)),
                pl.BlockSpec((nb, ckk, tm), lambda b, t: (b, 0, t)),
            ],
        ),
        compiler_params=pltpu.CompilerParams(
            dimension_semantics=("parallel", "parallel")),
        cost_estimate=pl.CostEstimate(
            flops=flops, transcendentals=0, bytes_accessed=bytes_accessed),
    )(x_img, x_ks, w_img, w_ks, b_img, b_ks)

    def _unshuffle(o):
        # (N, Cout*kh*kw, M) -> drop pad -> (N, Cout, H*kh, W*kw) pixel shuffle.
        # TODO(synk): this transpose is one extra XLA HBM pass over the output;
        # fuse into the kernel once a safe lane-interleave lowering is confirmed.
        o = o[:, :, :hw].reshape(n, cout, kh, kw, h, w)
        o = jnp.transpose(o, (0, 1, 4, 2, 5, 3))
        return o.reshape(n, cout, h * kh, w * kw)

    return _unshuffle(out_img), _unshuffle(out_ks)


# --------------------------- module forward pass -----------------------------
def multidomain_conv_transpose2d(image, params):
    """image: (N, C, H, W) float32 with C even. Returns (N, OUT_CHANNELS, 2H, 2W)."""
    kspace = _fft2_pairs_nchw(image, inverse=False)
    img_out, ks_out = _fused_conv_transpose(image, kspace, params)
    backward = _fft2_pairs_nchw(ks_out, inverse=True)
    return jnp.concatenate([img_out, backward], axis=1)


# ------------------------------- param init ----------------------------------
def init_params(key, in_channels, out_channels, kh, kw):
    cout_half = out_channels // 2
    k_iw, k_ib, k_kw_, k_kb = jax.random.split(key, 4)
    bound = 1.0 / jnp.sqrt(in_channels * kh * kw)
    shape_w = (in_channels, cout_half, kh, kw)  # PyTorch ConvTranspose2d layout
    return {
        "image_w": jax.random.uniform(k_iw, shape_w, jnp.float32, -bound, bound),
        "image_b": jax.random.uniform(k_ib, (cout_half,), jnp.float32, -bound, bound),
        "kspace_w": jax.random.uniform(k_kw_, shape_w, jnp.float32, -bound, bound),
        "kspace_b": jax.random.uniform(k_kb, (cout_half,), jnp.float32, -bound, bound),
    }


# ------------------------- pure-JAX reference check ---------------------------
def _convt_ref(x, wgt, bias, kh, kw):
    # Exact-f32 ConvTranspose2d (stride == kernel_size, padding == 0) reference:
    # broadcast multiply + sum (no matmul), so the check is independent of any
    # XLA dot precision mode.
    n, cout = x.shape[0], wgt.shape[1]
    y = (x[:, :, None, :, :, None, None] *
         wgt[None, :, :, None, None, :, :]).sum(axis=1)   # (N,Cout,H,W,kh,kw)
    y = jnp.transpose(y, (0, 1, 2, 4, 3, 5))               # (N,Cout,H,kh,W,kw)
    y = y.reshape(n, cout, x.shape[2] * kh, x.shape[3] * kw)
    return y + bias[None, :, None, None]


def _reference_forward(image, params):
    kspace = _fft2_pairs_nchw(image, inverse=False)
    ks_out = _convt_ref(kspace, params["kspace_w"], params["kspace_b"], KH, KW)
    backward = _fft2_pairs_nchw(ks_out, inverse=True)
    img_out = _convt_ref(image, params["image_w"], params["image_b"], KH, KW)
    return jnp.concatenate([img_out, backward], axis=1)


# ---------------------------------- main --------------------------------------
if __name__ == "__main__":
    key = jax.random.PRNGKey(0)
    params = init_params(jax.random.fold_in(key, 1), IN_CHANNELS, OUT_CHANNELS, KH, KW)

    fwd = jax.jit(multidomain_conv_transpose2d)
    ref_fn = jax.jit(_reference_forward)

    # Primary small shape, plus shapes exercising multi-image batch blocking
    # (nb=2) and the multi-M-tile / two-step-grid path.
    test_shapes = [
        (2, IN_CHANNELS, 16, 16),
        (4, IN_CHANNELS, 16, 16),
        (1, IN_CHANNELS, 32, 48),
    ]
    # Tolerance: 10x tighter than before; any layout/ordering bug gives O(0.1)
    # errors, while 2e-3 leaves headroom for MXU f32-pass rounding in the kernel.
    TOL = 2e-3
    for i, shp in enumerate(test_shapes):
        x = jax.random.normal(jax.random.fold_in(key, 100 + i), shp, dtype=jnp.float32)
        out = jax.block_until_ready(fwd(x, params))
        n, c, h, w = shp
        assert out.shape == (n, OUT_CHANNELS, h * STRIDE, w * STRIDE), out.shape
        assert out.dtype == jnp.float32
        assert bool(jnp.all(jnp.isfinite(out)))

        ref = jax.block_until_ready(ref_fn(x, params))
        max_err = float(jnp.max(jnp.abs(out - ref)))
        assert max_err < TOL, f"shape {shp}: mismatch vs reference: {max_err}"

    print("KERNEL_OK")
</pallas_src>

<mosaic_0001>
module attributes {stable_mosaic.version = 11 : i64} {
  func.func @_fused_convt_kernel(%arg0: i32, %arg1: i32, %arg2: memref<1x4x256xf32, #tpu.memory_space<vmem>>, %arg3: memref<1x4x256xf32, #tpu.memory_space<vmem>>, %arg4: memref<16x4xf32, #tpu.memory_space<vmem>>, %arg5: memref<16x4xf32, #tpu.memory_space<vmem>>, %arg6: memref<16x1xf32, #tpu.memory_space<vmem>>, %arg7: memref<16x1xf32, #tpu.memory_space<vmem>>, %arg8: memref<1x16x256xf32, #tpu.memory_space<vmem>>, %arg9: memref<1x16x256xf32, #tpu.memory_space<vmem>>) attributes {dimension_semantics = [#tpu.dimension_semantics<parallel>, #tpu.dimension_semantics<parallel>], iteration_bounds = array<i64: 2, 1>, scalar_prefetch = 0 : i64, scratch_operands = 0 : i64, tpu.core_type = #tpu.core_type<tc>, window_params = [{transform_indices = @transform_0, window_bounds = array<i64: 1, 4, 256>}, {transform_indices = @transform_1, window_bounds = array<i64: 1, 4, 256>}, {pipeline_mode = #tpu.pipeline_mode<synchronous>, transform_indices = @transform_2, window_bounds = array<i64: 16, 4>}, {pipeline_mode = #tpu.pipeline_mode<synchronous>, transform_indices = @transform_3, window_bounds = array<i64: 16, 4>}, {pipeline_mode = #tpu.pipeline_mode<synchronous>, transform_indices = @transform_4, window_bounds = array<i64: 16, 1>}, {pipeline_mode = #tpu.pipeline_mode<synchronous>, transform_indices = @transform_5, window_bounds = array<i64: 16, 1>}, {transform_indices = @transform_6, window_bounds = array<i64: 1, 16, 256>}, {transform_indices = @transform_7, window_bounds = array<i64: 1, 16, 256>}]} {
    %c0 = arith.constant 0 : index
    %c0_0 = arith.constant 0 : index
    %0 = vector.load %arg4[%c0, %c0_0] : memref<16x4xf32, #tpu.memory_space<vmem>>, vector<16x4xf32>
    %c0_1 = arith.constant 0 : index
    %c0_2 = arith.constant 0 : index
    %1 = vector.load %arg5[%c0_1, %c0_2] : memref<16x4xf32, #tpu.memory_space<vmem>>, vector<16x4xf32>
    %c0_3 = arith.constant 0 : index
    %c0_4 = arith.constant 0 : index
    %2 = vector.load %arg6[%c0_3, %c0_4] : memref<16x1xf32, #tpu.memory_space<vmem>>, vector<16x1xf32>
    %c0_5 = arith.constant 0 : index
    %c0_6 = arith.constant 0 : index
    %3 = vector.load %arg7[%c0_5, %c0_6] : memref<16x1xf32, #tpu.memory_space<vmem>>, vector<16x1xf32>
    %c0_7 = arith.constant 0 : index
    %c0_8 = arith.constant 0 : index
    %c0_9 = arith.constant 0 : index
    %4 = vector.load %arg2[%c0_7, %c0_8, %c0_9] : memref<1x4x256xf32, #tpu.memory_space<vmem>>, vector<1x4x256xf32>
    %5 = vector.shape_cast %4 : vector<1x4x256xf32> to vector<4x256xf32>
    %cst = arith.constant dense<0.000000e+00> : vector<16x256xf32>
    %6 = tpu.matmul %0, %5, %cst {dimension_numbers = #tpu.dot_dimension_numbers<[1], [0], [0], [1], [0, 0, 1, 1], [], []>} : vector<16x4xf32>, vector<4x256xf32>, vector<16x256xf32> -> vector<16x256xf32>
    %7 = vector.broadcast %2 : vector<16x1xf32> to vector<16x256xf32>
    %8 = arith.addf %6, %7 : vector<16x256xf32>
    %c0_10 = arith.constant 0 : index
    %c0_11 = arith.constant 0 : index
    %c0_12 = arith.constant 0 : index
    %9 = vector.load %arg8[%c0_10, %c0_11, %c0_12] : memref<1x16x256xf32, #tpu.memory_space<vmem>>, vector<1x16x256xf32>
    %10 = vector.shape_cast %9 : vector<1x16x256xf32> to vector<16x256xf32>
    %11 = vector.shape_cast %8 : vector<16x256xf32> to vector<1x16x256xf32>
    tpu.vector_store %arg8[%c0_10, %c0_11, %c0_12], %11 {strides = array<i32>} : memref<1x16x256xf32, #tpu.memory_space<vmem>>, vector<1x16x256xf32>,
    %c0_13 = arith.constant 0 : index
    %c0_14 = arith.constant 0 : index
    %c0_15 = arith.constant 0 : index
    %12 = vector.load %arg3[%c0_13, %c0_14, %c0_15] : memref<1x4x256xf32, #tpu.memory_space<vmem>>, vector<1x4x256xf32>
    %13 = vector.shape_cast %12 : vector<1x4x256xf32> to vector<4x256xf32>
    %cst_16 = arith.constant dense<0.000000e+00> : vector<16x256xf32>
    %14 = tpu.matmul %1, %13, %cst_16 {dimension_numbers = #tpu.dot_dimension_numbers<[1], [0], [0], [1], [0, 0, 1, 1], [], []>} : vector<16x4xf32>, vector<4x256xf32>, vector<16x256xf32> -> vector<16x256xf32>
    %15 = vector.broadcast %3 : vector<16x1xf32> to vector<16x256xf32>
    %16 = arith.addf %14, %15 : vector<16x256xf32>
    %c0_17 = arith.constant 0 : index
    %c0_18 = arith.constant 0 : index
    %c0_19 = arith.constant 0 : index
    %17 = vector.load %arg9[%c0_17, %c0_18, %c0_19] : memref<1x16x256xf32, #tpu.memory_space<vmem>>, vector<1x16x256xf32>
    %18 = vector.shape_cast %17 : vector<1x16x256xf32> to vector<16x256xf32>
    %19 = vector.shape_cast %16 : vector<16x256xf32> to vector<1x16x256xf32>
    tpu.vector_store %arg9[%c0_17, %c0_18, %c0_19], %19 {strides = array<i32>} : memref<1x16x256xf32, #tpu.memory_space<vmem>>, vector<1x16x256xf32>,
    return
  }
  func.func @transform_0(%arg0: i32, %arg1: i32) -> (i32, i32, i32) {
    %c0_i32 = arith.constant 0 : i32
    %c0_i32_0 = arith.constant 0 : i32
    return %arg0, %c0_i32, %arg1 : i32, i32, i32
  }
  func.func @transform_1(%arg0: i32, %arg1: i32) -> (i32, i32, i32) {
    %c0_i32 = arith.constant 0 : i32
    %c0_i32_0 = arith.constant 0 : i32
    return %arg0, %c0_i32, %arg1 : i32, i32, i32
  }
  func.func @transform_2(%arg0: i32, %arg1: i32) -> (i32, i32) {
    %c0_i32 = arith.constant 0 : i32
    %c0_i32_0 = arith.constant 0 : i32
    %c0_i32_1 = arith.constant 0 : i32
    return %c0_i32, %c0_i32_0 : i32, i32
  }
  func.func @transform_3(%arg0: i32, %arg1: i32) -> (i32, i32) {
    %c0_i32 = arith.constant 0 : i32
    %c0_i32_0 = arith.constant 0 : i32
    %c0_i32_1 = arith.constant 0 : i32
    return %c0_i32, %c0_i32_0 : i32, i32
  }
  func.func @transform_4(%arg0: i32, %arg1: i32) -> (i32, i32) {
    %c0_i32 = arith.constant 0 : i32
    %c0_i32_0 = arith.constant 0 : i32
    %c0_i32_1 = arith.constant 0 : i32
    return %c0_i32, %c0_i32_0 : i32, i32
  }
  func.func @transform_5(%arg0: i32, %arg1: i32) -> (i32, i32) {
    %c0_i32 = arith.constant 0 : i32
    %c0_i32_0 = arith.constant 0 : i32
    %c0_i32_1 = arith.constant 0 : i32
    return %c0_i32, %c0_i32_0 : i32, i32
  }
  func.func @transform_6(%arg0: i32, %arg1: i32) -> (i32, i32, i32) {
    %c0_i32 = arith.constant 0 : i32
    %c0_i32_0 = arith.constant 0 : i32
    return %arg0, %c0_i32, %arg1 : i32, i32, i32
  }
  func.func @transform_7(%arg0: i32, %arg1: i32) -> (i32, i32, i32) {
    %c0_i32 = arith.constant 0 : i32
    %c0_i32_0 = arith.constant 0 : i32
    return %arg0, %c0_i32, %arg1 : i32, i32, i32
  }
}

</mosaic_0001>

<bundles_post_ra>
// kernel: multidomain_conv_transpose2d.1
= control target key start
LH: loop header
LB: loop body
LE: loop exit
PB: predicated region body
PF: predicated region fallthrough
CT: control target
= control target key end

     0   :  { %s874_s24 = smov 0   ;;  %s876_s25 = smov 0   ;;  %s941_s0 = inlined_call_operand.vmem [shape: f32[2,4,256], index: 0, kind: input, shape index: {}]   ;;  %s942_s1 = inlined_call_operand.vmem [shape: f32[2,4,256], index: 1, kind: input, shape index: {}]   ;;  %s943_s2 = inlined_call_operand.vmem [shape: f32[16,4], index: 2, kind: input, shape index: {}]   ;;  %s944_s3 = inlined_call_operand.vmem [shape: f32[16,4], index: 3, kind: input, shape index: {}]   ;;  %s945_s4 = inlined_call_operand.vmem [shape: f32[16,1], index: 4, kind: input, shape index: {}]   ;;  %s946_s5 = inlined_call_operand.vmem [shape: f32[16,1], index: 5, kind: input, shape index: {}]   ;;  %s947_s6 = inlined_call_operand.vmem [shape: f32[2,16,256], index: 6, kind: output, shape index: {0}]   ;;  %s948_s7 = inlined_call_operand.vmem [shape: f32[2,16,256], index: 7, kind: output, shape index: {1}]  }
   0x1   :  { %s878_s26 = smov 0  }
   0x2 LB: > { %s30_s27 = sadd.s32 1, %s826_s25  ;;  %p755_p0 = scmp.ge.s32.totalorder %s830_s26, 1  ;;  %s830_s26 = sphi %s878_s26, %s18_s26   ;;  %s826_s25 = sphi %s876_s25, %s950_s25   ;;  %s822_s24 = sphi %s874_s24, %s949_s24  }
   0x3   : > { %p32_p1 = scmp.ge.s32.totalorder %s30_s27, 2  ;;  %p280_p2 = scmp.lt.s32.totalorder %s830_s26, 3 }
   0x5   : > { %s952_s27 = smov (%p32_p1, %s30_s27), 0  ;;  %p281_p3 = pnand %p755_p0, %p280_p2 }
   0x6   : > { %p339_p4 = scmp.lt.s32.totalorder (!%p281_p3), %s822_s24, 1  ;;  %v832_v0 = vmov (!%p281_p3), 0.0   ;;  %v384_v1 = vld [vmem:[%s946_s5] sm:$0xff] (!%p281_p3)  ;;  %v833_v2 = vmov (!%p281_p3), 0   ;;  %v385_v4 = vld [vmem:[%s946_s5 + $0x8] sm:$0xff] (!%p281_p3)  ;;  %vm406_vm0 = vcmask (!%p281_p3), 1043456  }
   0x7   : > { %284 = sbr.rel (%p281_p3) target bundleno = 243 (0xf3), region = 44  ;;  %475 = vmatprep.mubr.f32.mxu0 (!%p281_p3), %v832_v0  ;;  %579 = vmatprep.mubr.f32.mxu1 (!%p281_p3), %v832_v0  ;;  %v382_v3 = vld [vmem:[%s945_s4] sm:$0xff] (!%p281_p3)  ;;  %v383_v5 = vld [vmem:[%s945_s4 + $0x8] sm:$0xff] (!%p281_p3)  ;;  %vm399_vm1 = vcmask (!%p281_p3), 31744  }
   0x8   : > { %805 = vset.pattern.permute.xlu1 (!%p281_p3), %v833_v2  ;;  %804 = vset.pattern.permute.xlu0 (!%p281_p3), %v833_v2  ;;  %v378_v10 = vld [vmem:[%s943_s2] sm:$0xff] (!%p281_p3)  ;;  %v379_v12 = vld [vmem:[%s943_s2 + $0x8] sm:$0xff] (!%p281_p3) }
   0x9   : > { %495 = vperm.xlu1 (!%p281_p3), %805, %v384_v1   ;;  %389 = vperm.xlu0 (!%p281_p3), %804, %v382_v3   ;;  %v380_v11 = vld [vmem:[%s944_s3] sm:$0xff] (!%p281_p3)  ;;  %v381_v13 = vld [vmem:[%s944_s3 + $0x8] sm:$0xff] (!%p281_p3) }
   0xd   : > { %500 = vperm.xlu1 (!%p281_p3), %805, %v385_v4   ;;  %394 = vperm.xlu0 (!%p281_p3), %804, %v383_v5  }
   0xe   : > { %s954_s24 = smov (!%p339_p4, %s822_s24), 1 }
   0xf   : > { %s774_s9 = sshll.u32 %s954_s24, 3 }
  0x10   : > { %s346_s16 = scalar_lea.vmem %s941_s0, %s774_s9  ;;  %s356_s19 = scalar_lea.vmem %s942_s1, %s774_s9 }
  0x11   : > { %v386_v6 = vld [vmem:[%s346_s16] sm:$0xff]  ;;  %s776_s9 = sshll.u32 %s954_s24, 5 }
  0x12   : > { %v492_v7 = vld [vmem:[%s356_s19] sm:$0xff]  ;;  %v398_v8 = vcombine.high %v386_v6, %v386_v6  ;;  %s366_s12 = scalar_lea.vmem %s947_s6, %s776_s9  ;;  %s376_s15 = scalar_lea.vmem %s948_s7, %s776_s9 }
  0x13   : > { %v504_v9 = vcombine.high %v492_v7, %v492_v7 }
  0x14   : > { %764 = vmatprep.subr.msk.mxu0 %vm406_vm0, %v398_v8 }
  0x15   : > { %768 = vmatprep.subr.msk.mxu1 %vm406_vm0, %v504_v9  ;;  %765 = vmatpush1.msk.msra.mxu0 %vm406_vm0, %v386_v6 }
  0x16   : > { %769 = vmatpush1.msk.msra.mxu1 %vm406_vm0, %v492_v7  ;;  %766 = vmatmul.mubr.msk.f32.vlgmr.msra.gmra.mrb[0].mxu0 %vm399_vm1, %v378_v10 }
  0x17   : > { %770 = vmatmul.mubr.msk.f32.vlgmr.msra.gmra.mrb[0].mxu1 %vm399_vm1, %v380_v11  ;;  %481 = vmatprep.mubr.f32.mxu0 %v832_v0 }
  0x18   : > { %585 = vmatprep.mubr.f32.mxu1 %v832_v0 }
  0x1a   : > { %767 = vmatmul.mubr.msk.f32.gmra.mrb[2].mxu0 %vm399_vm1, %v379_v12 }
  0x1b   : > { %771 = vmatmul.mubr.msk.f32.gmra.mrb[2].mxu1 %vm399_vm1, %v381_v13 }
  0x88   : > { %v496_v14 = vpop.permute.xlu1 %495  ;;  %v390_v15 = vpop.permute.xlu0 %389 }
  0x8c   : > { %v501_v24 = vpop.permute.xlu1 %500  ;;  %v395_v25 = vpop.permute.xlu0 %394 }
  0xe9   : > { %v477_v16 = vpop.f32.mrb[0].mxu0 }
  0xea   : > { %v581_v17 = vpop.f32.mrb[0].mxu1  ;;  %v478_v18 = vadd.f32 %v477_v16, %v390_v15  ;;  %v479_v20 = vpop.f32.mrb[1].mxu0 }
  0xeb   : > { %v582_v19 = vadd.f32 %v581_v17, %v496_v14  ;;  %v583_v21 = vpop.f32.mrb[1].mxu1  ;;  %v480_v22 = vadd.f32 %v479_v20, %v390_v15 }
  0xec   : > { %v584_v23 = vadd.f32 %v583_v21, %v496_v14  ;;  %488 = vst [vmem:[%s366_s12] sm:$0xff] %v478_v18 }
  0xed   : > { %592 = vst [vmem:[%s376_s15] sm:$0xff] %v582_v19  ;;  %489 = vst [vmem:[%s366_s12 + $0x8] sm:$0xff] %v480_v22  ;;  %v483_v26 = vpop.f32.mrb[2].mxu0 }
  0xee   : > { %593 = vst [vmem:[%s376_s15 + $0x8] sm:$0xff] %v584_v23  ;;  %v587_v27 = vpop.f32.mrb[2].mxu1  ;;  %v484_v28 = vadd.f32 %v483_v26, %v395_v25  ;;  %v485_v30 = vpop.f32.mrb[3].mxu0 }
  0xef   : > { %v588_v29 = vadd.f32 %v587_v27, %v501_v24  ;;  %v589_v31 = vpop.f32.mrb[3].mxu1  ;;  %v486_v32 = vadd.f32 %v485_v30, %v395_v25 }
  0xf0   : > { %v590_v33 = vadd.f32 %v589_v31, %v501_v24  ;;  %490 = vst [vmem:[%s366_s12 + $0x10] sm:$0xff] %v484_v28 }
  0xf1   : > { %594 = vst [vmem:[%s376_s15 + $0x10] sm:$0xff] %v588_v29  ;;  %491 = vst [vmem:[%s366_s12 + $0x18] sm:$0xff] %v486_v32 }
  0xf2   : > { %595 = vst [vmem:[%s376_s15 + $0x18] sm:$0xff] %v590_v33 }
  0xf3 PF: > { %s18_s26 = sadd.s32 1, %s830_s26   ;;  %s949_s24 = smov %s826_s25 }
  0xf4   : > { %p15_p5 = scmp.ge.s32.totalorder %s18_s26, 4   ;;  %s950_s25 = smov %s952_s27 }
  0xf6   :  { %17 = sbr.rel (!%p15_p5) target bundleno = 2 (0x2), region = 89 }

</bundles_post_ra>
